<compile_context>
chip_gen: v7x
topology: tpu7x:2x2x1
jax: 0.10.0
libtpu: 0.0.40
codegen_flags: <defaults>
</compile_context>

<pallas_src>
import functools

import jax
import jax.numpy as jnp
from jax.experimental import pallas as pl
from jax.experimental.pallas import tpu as pltpu


def _round_up(x, m):
    return (x + m - 1) // m * m


def _channel_attention_kernel(x_ref, w1_ref, w2_ref, o_ref, sum_ref, max_ref,
                              *, true_hw, block_hw, mask_tail):
    # x block: (1, C, block_hw)   w1: (Ch, C)   w2: (C, Ch)   o block: (1, 1, C)
    hw = pl.program_id(1)

    @pl.when(hw == 0)
    def _init():
        sum_ref[...] = jnp.zeros_like(sum_ref)
        max_ref[...] = jnp.full_like(max_ref, -jnp.inf)

    x = x_ref[0]                                            # (C, block_hw)

    if mask_tail:
        # Mask lanes beyond the true spatial extent (ragged / padded tail
        # tile: the out-of-bounds VMEM content is unspecified, so select it
        # away before reducing).
        lane = jax.lax.broadcasted_iota(jnp.int32, x.shape, 1)
        valid = (hw * block_hw + lane) < true_hw
        x_sum = jnp.where(valid, x, jnp.zeros((), x.dtype))
        x_max = jnp.where(valid, x, jnp.array(-jnp.inf, dtype=x.dtype))
    else:
        x_sum = x
        x_max = x

    # Partial reductions for this spatial tile; accumulate in f32 without
    # materializing an f32 copy of the whole tile.
    psum = jnp.sum(x_sum, axis=-1, keepdims=True, dtype=jnp.float32)   # (C, 1)
    pmax = jnp.max(x_max, axis=-1, keepdims=True).astype(jnp.float32)  # (C, 1)

    sum_ref[...] = sum_ref[...] + psum
    max_ref[...] = jnp.maximum(max_ref[...], pmax)

    # Shared MLP + sigmoid only on the last spatial tile of this batch element.
    @pl.when(hw == pl.num_programs(1) - 1)
    def _finalize():
        avg = sum_ref[...] * (1.0 / float(true_hw))                    # (C, 1)
        mx = max_ref[...]                                              # (C, 1)

        # Fuse the avg / max MLP paths into one (C, 2) operand (col 0 = avg).
        col = jax.lax.broadcasted_iota(jnp.int32, (avg.shape[0], 2), 1)
        pooled = jnp.where(col == 0, avg, mx)                          # (C, 2)

        w1 = w1_ref[...].astype(jnp.float32)                           # (Ch, C)
        w2 = w2_ref[...].astype(jnp.float32)                           # (C, Ch)

        h = jnp.maximum(
            jnp.dot(w1, pooled, preferred_element_type=jnp.float32), 0.0)   # (Ch, 2)
        # (2, C) = h.T @ w2.T via dot_general so the result lands with C on
        # lanes (lane-dense output block) without an explicit transpose.
        o_t = jax.lax.dot_general(h, w2, (((0,), (1,)), ((), ())),
                                  preferred_element_type=jnp.float32)  # (2, C)
        out = jax.nn.sigmoid(o_t[0:1, :] + o_t[1:2, :])                # (1, C)
        o_ref[0] = out.astype(o_ref.dtype)


def channel_attention(x_nchw, w1, w2, *, block_hw_cap=4096,
                      vmem_target_bytes=4 * 1024 * 1024):
    """x_nchw: (N, C, H, W); w1: (C//r, C); w2: (C, C//r). Returns (N, C, 1, 1)."""
    N, C, H, W = x_nchw.shape
    Ch = w1.shape[0]
    HW = H * W
    itemsize = jnp.dtype(x_nchw.dtype).itemsize

    # Spatial tile: multiple of 128 lanes, bounded so one input buffer stays
    # comfortably double-bufferable within every generation's scoped VMEM.
    max_lanes = max(128, (vmem_target_bytes // max(1, C * itemsize)) // 128 * 128)
    block_hw = min(_round_up(HW, 128), max_lanes, block_hw_cap)
    num_hw_tiles = pl.cdiv(HW, block_hw)
    mask_tail = (num_hw_tiles * block_hw != HW)

    # No input padding: a ragged last tile is masked inside the kernel, so we
    # never pay for an extra HBM copy of x.
    x_flat = x_nchw.reshape(N, C, HW)

    kernel = functools.partial(_channel_attention_kernel,
                               true_hw=HW, block_hw=block_hw,
                               mask_tail=mask_tail)

    out = pl.pallas_call(
        kernel,
        out_shape=jax.ShapeDtypeStruct((N, 1, C), x_nchw.dtype),
        grid_spec=pltpu.PrefetchScalarGridSpec(
            num_scalar_prefetch=0,
            grid=(N, num_hw_tiles),
            in_specs=[
                pl.BlockSpec((1, C, block_hw), lambda n, h: (n, 0, h)),
                pl.BlockSpec((Ch, C), lambda n, h: (0, 0)),
                pl.BlockSpec((C, Ch), lambda n, h: (0, 0)),
            ],
            out_specs=pl.BlockSpec((1, 1, C), lambda n, h: (n, 0, 0)),
            scratch_shapes=[
                pltpu.VMEM((C, 1), jnp.float32),   # running sum
                pltpu.VMEM((C, 1), jnp.float32),   # running max
            ],
        ),
        compiler_params=pltpu.CompilerParams(
            dimension_semantics=("parallel", "arbitrary")),
    )(x_flat, w1, w2)

    return out.reshape(N, C, 1, 1)


def channel_attention_ref(x, w1, w2):
    # pure-JAX reference of the PyTorch forward pass
    avg = jnp.mean(x, axis=(2, 3))                         # (N, C)
    mx = jnp.max(x, axis=(2, 3))                           # (N, C)
    avg_o = jnp.maximum(avg @ w1.T, 0.0) @ w2.T
    max_o = jnp.maximum(mx @ w1.T, 0.0) @ w2.T
    return jax.nn.sigmoid(avg_o + max_o)[:, :, None, None]


if __name__ == "__main__":
    # module config: in_channels=64, ratio=16 -> hidden channels = 4
    N, C, H, W = 2, 64, 16, 16
    ratio = 16
    Ch = C // ratio

    key = jax.random.PRNGKey(0)
    kx, k1, k2 = jax.random.split(key, 3)

    x = jax.random.normal(kx, (N, C, H, W), dtype=jnp.float32)
    # Conv2d(.., 1, bias=False) weights are (out, in, 1, 1); keep squeezed (out, in).
    w1 = jax.random.normal(k1, (Ch, C), dtype=jnp.float32) * (1.0 / jnp.sqrt(C))
    w2 = jax.random.normal(k2, (C, Ch), dtype=jnp.float32) * (1.0 / jnp.sqrt(Ch))

    out = channel_attention(x, w1, w2)
    out = jax.block_until_ready(out)

    ref = channel_attention_ref(x, w1, w2)
    assert out.shape == (N, C, 1, 1)
    assert jnp.allclose(out, ref, atol=1e-5, rtol=1e-5)

    print("KERNEL_OK")
</pallas_src>

<mosaic_0001>
module attributes {stable_mosaic.version = 11 : i64} {
  func.func @_channel_attention_kernel(%arg0: i32, %arg1: i32, %arg2: memref<1x64x256xf32, #tpu.memory_space<vmem>>, %arg3: memref<4x64xf32, #tpu.memory_space<vmem>>, %arg4: memref<64x4xf32, #tpu.memory_space<vmem>>, %arg5: memref<1x1x64xf32, #tpu.memory_space<vmem>>, %arg6: memref<64x1xf32, #tpu.memory_space<vmem>>, %arg7: memref<64x1xf32, #tpu.memory_space<vmem>>) attributes {dimension_semantics = [#tpu.dimension_semantics<parallel>, #tpu.dimension_semantics<arbitrary>], iteration_bounds = array<i64: 2, 1>, scalar_prefetch = 0 : i64, scratch_operands = 2 : i64, tpu.core_type = #tpu.core_type<tc>, window_params = [{transform_indices = @transform_0, window_bounds = array<i64: 1, 64, 256>}, {pipeline_mode = #tpu.pipeline_mode<synchronous>, transform_indices = @transform_1, window_bounds = array<i64: 4, 64>}, {pipeline_mode = #tpu.pipeline_mode<synchronous>, transform_indices = @transform_2, window_bounds = array<i64: 64, 4>}, {transform_indices = @transform_3, window_bounds = array<i64: 1, 1, 64>}]} {
    %c0_i32 = arith.constant 0 : i32
    %0 = arith.cmpi eq, %arg1, %c0_i32 : i32
    %1 = arith.extui %0 : i1 to i32
    %c0_i32_0 = arith.constant 0 : i32
    %2 = arith.cmpi ne, %1, %c0_i32_0 : i32
    scf.if %2 {
      %cst_14 = arith.constant 0.000000e+00 : f32
      %18 = vector.broadcast %cst_14 : f32 to vector<64x1xf32>
      %c0_15 = arith.constant 0 : index
      %c0_16 = arith.constant 0 : index
      %19 = vector.load %arg6[%c0_15, %c0_16] : memref<64x1xf32, #tpu.memory_space<vmem>>, vector<64x1xf32>
      tpu.vector_store %arg6[%c0_15, %c0_16], %18 {strides = array<i32>} : memref<64x1xf32, #tpu.memory_space<vmem>>, vector<64x1xf32>,
      %cst_17 = arith.constant 0xFF800000 : f32
      %20 = vector.broadcast %cst_17 : f32 to vector<64x1xf32>
      %c0_18 = arith.constant 0 : index
      %c0_19 = arith.constant 0 : index
      %21 = vector.load %arg7[%c0_18, %c0_19] : memref<64x1xf32, #tpu.memory_space<vmem>>, vector<64x1xf32>
      tpu.vector_store %arg7[%c0_18, %c0_19], %20 {strides = array<i32>} : memref<64x1xf32, #tpu.memory_space<vmem>>, vector<64x1xf32>,
    } else {
    }
    %c0 = arith.constant 0 : index
    %c0_1 = arith.constant 0 : index
    %c0_2 = arith.constant 0 : index
    %3 = vector.load %arg2[%c0, %c0_1, %c0_2] : memref<1x64x256xf32, #tpu.memory_space<vmem>>, vector<1x64x256xf32>
    %4 = vector.shape_cast %3 : vector<1x64x256xf32> to vector<64x256xf32>
    %cst = arith.constant dense<0.000000e+00> : vector<64xf32>
    %5 = vector.multi_reduction <add>, %4, %cst [1] : vector<64x256xf32> to vector<64xf32>
    %6 = vector.shape_cast %5 : vector<64xf32> to vector<64x1xf32>
    %cst_3 = arith.constant dense<0xFF800000> : vector<64xf32>
    %7 = vector.multi_reduction <maximumf>, %4, %cst_3 [1] : vector<64x256xf32> to vector<64xf32>
    %8 = vector.shape_cast %7 : vector<64xf32> to vector<64x1xf32>
    %c0_4 = arith.constant 0 : index
    %c0_5 = arith.constant 0 : index
    %9 = vector.load %arg6[%c0_4, %c0_5] : memref<64x1xf32, #tpu.memory_space<vmem>>, vector<64x1xf32>
    %10 = arith.addf %9, %6 : vector<64x1xf32>
    %c0_6 = arith.constant 0 : index
    %c0_7 = arith.constant 0 : index
    %11 = vector.load %arg6[%c0_6, %c0_7] : memref<64x1xf32, #tpu.memory_space<vmem>>, vector<64x1xf32>
    tpu.vector_store %arg6[%c0_6, %c0_7], %10 {strides = array<i32>} : memref<64x1xf32, #tpu.memory_space<vmem>>, vector<64x1xf32>,
    %c0_8 = arith.constant 0 : index
    %c0_9 = arith.constant 0 : index
    %12 = vector.load %arg7[%c0_8, %c0_9] : memref<64x1xf32, #tpu.memory_space<vmem>>, vector<64x1xf32>
    %13 = arith.maximumf %12, %8 : vector<64x1xf32>
    %c0_10 = arith.constant 0 : index
    %c0_11 = arith.constant 0 : index
    %14 = vector.load %arg7[%c0_10, %c0_11] : memref<64x1xf32, #tpu.memory_space<vmem>>, vector<64x1xf32>
    tpu.vector_store %arg7[%c0_10, %c0_11], %13 {strides = array<i32>} : memref<64x1xf32, #tpu.memory_space<vmem>>, vector<64x1xf32>,
    %c0_i32_12 = arith.constant 0 : i32
    %15 = arith.cmpi eq, %arg1, %c0_i32_12 : i32
    %16 = arith.extui %15 : i1 to i32
    %c0_i32_13 = arith.constant 0 : i32
    %17 = arith.cmpi ne, %16, %c0_i32_13 : i32
    scf.if %17 {
      %c0_14 = arith.constant 0 : index
      %c0_15 = arith.constant 0 : index
      %18 = vector.load %arg6[%c0_14, %c0_15] : memref<64x1xf32, #tpu.memory_space<vmem>>, vector<64x1xf32>
      %cst_16 = arith.constant 3.906250e-03 : f32
      %19 = vector.broadcast %cst_16 : f32 to vector<64x1xf32>
      %20 = arith.mulf %18, %19 : vector<64x1xf32>
      %c0_17 = arith.constant 0 : index
      %c0_18 = arith.constant 0 : index
      %21 = vector.load %arg7[%c0_17, %c0_18] : memref<64x1xf32, #tpu.memory_space<vmem>>, vector<64x1xf32>
      %22 = tpu.iota {dimensions = array<i32: 1>} : vector<64x2xi32>
      %c0_i32_19 = arith.constant 0 : i32
      %23 = vector.broadcast %c0_i32_19 : i32 to vector<64x2xi32>
      %24 = arith.cmpi eq, %22, %23 : vector<64x2xi32>
      %25 = vector.shape_cast %20 : vector<64x1xf32> to vector<64x1xf32>
      %26 = vector.broadcast %25 : vector<64x1xf32> to vector<64x2xf32>
      %27 = vector.shape_cast %21 : vector<64x1xf32> to vector<64x1xf32>
      %28 = vector.broadcast %27 : vector<64x1xf32> to vector<64x2xf32>
      %29 = arith.select %24, %26, %28 : vector<64x2xi1>, vector<64x2xf32>
      %c0_20 = arith.constant 0 : index
      %c0_21 = arith.constant 0 : index
      %30 = vector.load %arg3[%c0_20, %c0_21] : memref<4x64xf32, #tpu.memory_space<vmem>>, vector<4x64xf32>
      %c0_22 = arith.constant 0 : index
      %c0_23 = arith.constant 0 : index
      %31 = vector.load %arg4[%c0_22, %c0_23] : memref<64x4xf32, #tpu.memory_space<vmem>>, vector<64x4xf32>
      %cst_24 = arith.constant dense<0.000000e+00> : vector<4x2xf32>
      %32 = tpu.matmul %30, %29, %cst_24 {dimension_numbers = #tpu.dot_dimension_numbers<[1], [0], [0], [1], [0, 0, 1, 1], [], []>} : vector<4x64xf32>, vector<64x2xf32>, vector<4x2xf32> -> vector<4x2xf32>
      %cst_25 = arith.constant 0.000000e+00 : f32
      %33 = vector.broadcast %cst_25 : f32 to vector<4x2xf32>
      %34 = arith.maximumf %32, %33 : vector<4x2xf32>
      %cst_26 = arith.constant dense<0.000000e+00> : vector<2x64xf32>
      %35 = tpu.matmul %34, %31, %cst_26 {dimension_numbers = #tpu.dot_dimension_numbers<[0], [1], [1], [0], [0, 1, 1, 0], [], []>} : vector<4x2xf32>, vector<64x4xf32>, vector<2x64xf32> -> vector<2x64xf32>
      %36 = vector.extract_strided_slice %35 {offsets = [0, 0], sizes = [1, 64], strides = [1, 1]} : vector<2x64xf32> to vector<1x64xf32>
      %37 = vector.extract_strided_slice %35 {offsets = [1, 0], sizes = [1, 64], strides = [1, 1]} : vector<2x64xf32> to vector<1x64xf32>
      %38 = arith.addf %36, %37 : vector<1x64xf32>
      %39 = arith.negf %38 : vector<1x64xf32>
      %40 = math.exp %39 : vector<1x64xf32>
      %cst_27 = arith.constant 1.000000e+00 : f32
      %41 = vector.broadcast %cst_27 : f32 to vector<1x64xf32>
      %42 = arith.addf %41, %40 : vector<1x64xf32>
      %43 = arith.divf %41, %42 : vector<1x64xf32>
      %c0_28 = arith.constant 0 : index
      %c0_29 = arith.constant 0 : index
      %c0_30 = arith.constant 0 : index
      %44 = vector.load %arg5[%c0_28, %c0_29, %c0_30] : memref<1x1x64xf32, #tpu.memory_space<vmem>>, vector<1x1x64xf32>
      %45 = vector.shape_cast %44 : vector<1x1x64xf32> to vector<1x64xf32>
      %46 = vector.shape_cast %43 : vector<1x64xf32> to vector<1x1x64xf32>
      tpu.vector_store %arg5[%c0_28, %c0_29, %c0_30], %46 {strides = array<i32>} : memref<1x1x64xf32, #tpu.memory_space<vmem>>, vector<1x1x64xf32>,
    } else {
    }
    return
  }
  func.func @transform_0(%arg0: i32, %arg1: i32) -> (i32, i32, i32) {
    %c0_i32 = arith.constant 0 : i32
    %c0_i32_0 = arith.constant 0 : i32
    return %arg0, %c0_i32, %arg1 : i32, i32, i32
  }
  func.func @transform_1(%arg0: i32, %arg1: i32) -> (i32, i32) {
    %c0_i32 = arith.constant 0 : i32
    %c0_i32_0 = arith.constant 0 : i32
    %c0_i32_1 = arith.constant 0 : i32
    return %c0_i32, %c0_i32_0 : i32, i32
  }
  func.func @transform_2(%arg0: i32, %arg1: i32) -> (i32, i32) {
    %c0_i32 = arith.constant 0 : i32
    %c0_i32_0 = arith.constant 0 : i32
    %c0_i32_1 = arith.constant 0 : i32
    return %c0_i32, %c0_i32_0 : i32, i32
  }
  func.func @transform_3(%arg0: i32, %arg1: i32) -> (i32, i32, i32) {
    %c0_i32 = arith.constant 0 : i32
    %c0_i32_0 = arith.constant 0 : i32
    %c0_i32_1 = arith.constant 0 : i32
    return %arg0, %c0_i32, %c0_i32_0 : i32, i32, i32
  }
}

</mosaic_0001>

<bundles_post_ra>
// kernel: tpu_custom_call.1
= control target key start
LH: loop header
LB: loop body
LE: loop exit
PB: predicated region body
PF: predicated region fallthrough
CT: control target
= control target key end

     0   :  { %8 = vsyncpa [#allocation5], 0  ;;  %s1431_s0 = inlined_call_operand.hbm [shape: f32[2,64,256], index: 0, kind: input, shape index: {}]   ;;  %s1432_s1 = inlined_call_operand.vmem [shape: f32[4,64], index: 1, kind: input, shape index: {}]   ;;  %s1433_s2 = inlined_call_operand.vmem [shape: f32[64,4], index: 2, kind: input, shape index: {}]   ;;  %s1434_s3 = inlined_call_operand.hbm [shape: f32[2,1,64], index: 3, kind: output, shape index: {}]  }
   0x1   :  { %10 = vsyncpa [#allocation5 + $0x1], 0 }
   0x2   :  { %11 = vsyncpa [#allocation6], 0 }
   0x3   :  { %13 = vsyncpa [#allocation6 + $0x1], 0  ;;  %s1139_s12 = smov 0   ;;  %s1141_s13 = smov 0  }
   0x4   :  { %s1143_s14 = smov 0   ;;  %s1145_s15 = smov 0  }
   0x5   :  { %s1147_s16 = smov 0   ;;  %s1149_s17 = smov 0  }
   0x6 LB: > { %s773_s18 = sadd.s32 4294967295, %s1108_s17   ;;  %s774_s19 = sadd.s32 4294967294, %s1108_s17   ;;  %s1108_s17 = sphi %s1149_s17, %s19_s17   ;;  %s1104_s16 = sphi %s1147_s16, %s1451_s16   ;;  %s1100_s15 = sphi %s1145_s15, %s1450_s15   ;;  %s1096_s14 = sphi %s1143_s14, %s1449_s14   ;;  %s1092_s13 = sphi %s1141_s13, %s1448_s13   ;;  %s1088_s12 = sphi %s1139_s12, %s1447_s12  }
   0x7   : > { %s31_s20 = sadd.s32 1, %s1104_s16  ;;  %s40_s21 = sadd.s32 1, %s1096_s14 }
   0x8   : > { %p33_p0 = scmp.ge.s32.totalorder %s31_s20, 2  ;;  %p47_p1 = scmp.ne.s32.totalorder %s1096_s14, %s1092_s13 }
   0x9   : > { %p48_p2 = scmp.eq.s32.totalorder %s1108_s17, 0  ;;  %p53_p3 = scmp.ne.s32.totalorder %s1092_s13, %s1088_s12 }
   0xa   : > { %s1453_s20 = smov (%p33_p0, %s31_s20), 0  ;;  %p54_p5 = scmp.eq.s32.totalorder %s773_s18, 0 }
   0xb   : > { %p1180_p4 = por %p48_p2, %p47_p1  ;;  %s35_s23 = ssub.s32 %s1104_s16, %s1453_s20 }
   0xc   : > { %p119_p6 = scmp.eq.s32.totalorder %s773_s18, 1  ;;  %p38_p7 = scmp.eq.s32.totalorder %s35_s23, 0 }
   0xd   : > { %p1186_p8 = por %p54_p5, %p53_p3  ;;  %p125_p10 = scmp.eq.s32.totalorder %s774_s19, 1 }
   0xe   : > { %p1190_p9 = por %p119_p6, %p47_p1  ;;  %p893_p13 = scmp.lt.s32.totalorder %s1108_s17, 2 }
   0xf   : > { %s1195_s26 = scalar_select %p38_p7, %s1096_s14, %s40_s21  }
  0x10   : > { %s1438_s25 = scalar_select %p1190_p9, 1, 0 }
  0x11   : > { %p1197_p11 = por %p125_p10, %p53_p3  ;;  %s151_s28 = sand.u32 1, %s1096_s14  }
  0x12   : > { %s777_s29 = sshll.u32 %s151_s28, 7  ;;  %s796_s30 = sshll.u32 %s1104_s16, 11 }
  0x13   : > { %s1439_s27 = scalar_select %p1197_p11, 1, 0 }
  0x14   : > { %s1208_s6 = scalar_lea.hbm %s1431_s0, %s796_s30  ;;  %s155_s7 = scalar_lea.vmem [#allocation4], %s777_s29 }
  0x15   : > { %s164_s8 = sshll.u32 %s155_s7, 4  ;;  %p1214_p0 = pnand %p893_p13, %p1180_p4  ;;  %s1210_s8 = int_to_ptr.vmem [resolvable:$true] %s164_s8 }
  0x16   : > { %s1219_s10 = scalar_lea.sflag [#allocation5], %s151_s28  ;;  %s996_s11 = scalar_lea.hbm %s1208_s6, 2048 }
  0x17   : > { %p997_p2 = scmp.ne.s32.totalorder %s1208_s6, %s996_s11  ;;  %p998_p3 = pneg %p1214_p0 }
  0x18   : > { %s1001_s21 = scalar_lea.hbm %s1431_s0, 4096  ;;  %p1002_p4 = scmp.lt.u32.totalorder %s1208_s6, %s1431_s0 }
  0x19   : > { %p999_p5 = pnand %p998_p3, %p997_p2  ;;  %p1003_p7 = scmp.lt.u32.totalorder %s1001_s21, %s996_s11 }
  0x1a   : > { %p1005_p13 = scmp.lt.u32.totalorder %s996_s11, %s1208_s6 }
  0x1b   : > { %p1000_p6 = pneg %p999_p5  ;;  %p1004_p10 = por %p1003_p7, %p1002_p4 }
  0x1d   : > { %p1006_p12 = por %p1005_p13, %p1004_p10 }
  0x1f   : > { %p1007_p1 = pnand %p1006_p12, %p1000_p6 }
  0x21   : > { %1010 = shalt.err (!%p1007_p1)
}
  0x22   : > { %s1011_s28 = scalar_lea.vmem %s1210_s8, 2048  ;;  %s1110_s29 = smov [#allocation4]  }
  0x23   : > { %p1012_p2 = scmp.ne.s32.totalorder %s1210_s8, %s1011_s28  ;;  %s1016_s30 = sshll.u32 %s1110_s29, 4  ;;  %s1017_s30 = int_to_ptr.vmem [resolvable:$false] %s1016_s30 }
  0x24   : > { %s1018_s4 = scalar_lea.vmem %s1017_s30, 4096  ;;  %p1019_p9 = scmp.lt.s32.totalorder %s1210_s8, %s1017_s30 }
  0x25   : > { %p1014_p5 = pnand %p1012_p2, %p998_p3  ;;  %p1020_p4 = scmp.lt.s32.totalorder %s1018_s4, %s1011_s28 }
  0x27   : > { %p1015_p11 = pneg %p1014_p5  ;;  %p1021_p7 = por %p1020_p4, %p1019_p9 }
  0x29   : > { %p1022_p10 = pnand %p1021_p7, %p1015_p11 }
  0x2b   : > { %1025 = shalt.err (!%p1022_p10)
}
  0x2c   : > { %s1111_s5 = smov 256   ;;  %s1112_s7 = smov 16  }
  0x2d   : > { %888 = dma.hbm_to_vmem [thread:$0]  (!%p1214_p0), %s1208_s6, 2048, %s1210_s8, %s1219_s10, %s1111_s5, %s1111_s5, %s1112_s7  }
  0x2e   : > { %p172_p12 = scmp.lt.s32.totalorder %s1108_s17, 3  ;;  %p1441_p1 = scmp.ge.s32.totalorder %s1108_s17, 1 }
  0x30   : > { %p173_p3 = pnand %p1441_p1, %p172_p12 }
  0x31   : > { %s1251_s11 = sand.u32 (!%p173_p3), 1, %s1092_s13  }
  0x32   : > { %176 = sbr.rel (%p173_p3) target bundleno = 986 (0x3da), region = 32  ;;  %s781_s18 = sshll.u32 (!%p173_p3), %s1251_s11, 7 }
  0x33   : > { %s179_s19 = scalar_lea.sflag (!%p173_p3), [#allocation5], %s1251_s11  ;;  %s1255_s21 = scalar_lea.vmem (!%p173_p3), [#allocation4], %s781_s18 }
  0x39   : > { %1079 = dma.done.wait (%p1186_p8), %s179_s19, 2048  }
  0x3a   : > { %1081 = vsyncadd (%p1186_p8), %s179_s19, 4294965248  ;;  %vm209_vm0 = vcmask 7168   ;;  %v1113_v0 = vmov -inf   ;;  %v226_v1 = vld [vmem:[%s1255_s21] sm:$0xff]  ;;  %v227_v2 = vld [vmem:[%s1255_s21 + $0x8] sm:$0xff]  ;;  %v1114_v15 = vmov 0.0  }
  0x3b   : > { %218 = vst.msk [vmem:[#allocation3] sm:$0xff] %vm209_vm0, %v1113_v0  ;;  %219 = vst.msk [vmem:[#allocation3 + $0x8] sm:$0xff] %vm209_vm0, %v1113_v0  ;;  %v228_v3 = vld [vmem:[%s1255_s21 + $0x10] sm:$0xff]  ;;  %v266_v4 = vmax.f32 %v226_v1, %v227_v2  ;;  %v242_v5 = vadd.f32 %v227_v2, %v226_v1  ;;  %v229_v6 = vld [vmem:[%s1255_s21 + $0x18] sm:$0xff]  ;;  %v1115_v34 = vmov 0   ;;  %vm1117_vm1 = vmmov 0  }
  0x3c   : > { %220 = vst.msk [vmem:[#allocation3 + $0x10] sm:$0xff] %vm209_vm0, %v1113_v0  ;;  %221 = vst.msk [vmem:[#allocation3 + $0x18] sm:$0xff] %vm209_vm0, %v1113_v0  ;;  %v269_v7 = vmax.f32 %v228_v3, %v229_v6  ;;  %v245_v8 = vadd.f32 %v229_v6, %v228_v3  ;;  %v232_v9 = vld [vmem:[%s1255_s21 + $0x30] sm:$0xff]  ;;  %v233_v10 = vld [vmem:[%s1255_s21 + $0x38] sm:$0xff]  ;;  %956 = vset.pattern.permute.xlu1 %v1115_v34  ;;  %950 = vset.pattern.permute.xlu0 %v1115_v34  ;;  %vm466_vm3 = vcmask 523264   ;;  %vm573_vm4 = vcmask 31744  }
  0x3d   : > { %222 = vst.msk [vmem:[#allocation3 + $0x20] sm:$0xff] %vm209_vm0, %v1113_v0  ;;  %223 = vst.msk [vmem:[#allocation3 + $0x28] sm:$0xff] %vm209_vm0, %v1113_v0  ;;  %267 = vmax.xlane.f32.xlu1 %v266_v4  ;;  %243 = vadd.xlane.f32.xlu0 %v242_v5  ;;  %v230_v11 = vld [vmem:[%s1255_s21 + $0x20] sm:$0xff]  ;;  %v231_v12 = vld [vmem:[%s1255_s21 + $0x28] sm:$0xff]  ;;  %v251_v13 = vadd.f32 %v233_v10, %v232_v9  ;;  %v275_v16 = vmax.f32 %v232_v9, %v233_v10  ;;  %s793_s8 = sshll.u32 %s1100_s15, 4  ;;  %s203_s9 = scalar_lea.vmem [#allocation7], %s1251_s11 }
  0x3e   : > { %224 = vst.msk [vmem:[#allocation3 + $0x30] sm:$0xff] %vm209_vm0, %v1113_v0  ;;  %225 = vst.msk [vmem:[#allocation3 + $0x38] sm:$0xff] %vm209_vm0, %v1113_v0  ;;  %v248_v14 = vadd.f32 %v231_v12, %v230_v11  ;;  %v272_v17 = vmax.f32 %v230_v11, %v231_v12  ;;  %v236_v18 = vld [vmem:[%s1255_s21 + $0x50] sm:$0xff]  ;;  %v237_v19 = vld [vmem:[%s1255_s21 + $0x58] sm:$0xff]  ;;  %831 = vmatprep.mubr.msk.f32.mxu0 %vm1117_vm1, %v1114_v15  ;;  %850 = vmatprep.mubr.msk.f32.mxu1 %vm1117_vm1, %v1114_v15  ;;  %s696_s10 = sshll.u32 %s203_s9, 4  ;;  %vm681_vm6 = vcmask 516096   ;;  %s1382_s28 = scalar_lea.hbm %s1434_s3, %s793_s8  ;;  %s1384_s10 = int_to_ptr.vmem [resolvable:$true] %s696_s10 }
  0x3f   : > { %210 = vst.msk [vmem:[#allocation2] sm:$0xff] %vm209_vm0, %v1114_v15  ;;  %211 = vst.msk [vmem:[#allocation2 + $0x8] sm:$0xff] %vm209_vm0, %v1114_v15  ;;  %v234_v20 = vld [vmem:[%s1255_s21 + $0x40] sm:$0xff]  ;;  %v235_v21 = vld [vmem:[%s1255_s21 + $0x48] sm:$0xff]  ;;  %v257_v22 = vadd.f32 %v237_v19, %v236_v18  ;;  %v281_v24 = vmax.f32 %v236_v18, %v237_v19  ;;  %s684_s29 = scalar_lea.sflag [#allocation6], %s1251_s11  ;;  %s1026_s30 = scalar_lea.vmem %s1384_s10, 16 }
  0x40   : > { %212 = vst.msk [vmem:[#allocation2 + $0x10] sm:$0xff] %vm209_vm0, %v1114_v15  ;;  %213 = vst.msk [vmem:[#allocation2 + $0x18] sm:$0xff] %vm209_vm0, %v1114_v15  ;;  %v254_v23 = vadd.f32 %v235_v21, %v234_v20  ;;  %v278_v25 = vmax.f32 %v234_v20, %v235_v21  ;;  %v240_v26 = vld [vmem:[%s1255_s21 + $0x70] sm:$0xff]  ;;  %v241_v27 = vld [vmem:[%s1255_s21 + $0x78] sm:$0xff]  ;;  %p1027_p8 = scmp.ne.s32.totalorder %s1384_s10, %s1026_s30  ;;  %p1444_p9 = scmp.ne.s32.totalorder %s1438_s25, 0 }
  0x41   : > { %270 = vmax.xlane.f32.xlu1 %v269_v7  ;;  %246 = vadd.xlane.f32.xlu0 %v245_v8  ;;  %214 = vst.msk [vmem:[#allocation2 + $0x20] sm:$0xff] %vm209_vm0, %v1114_v15  ;;  %215 = vst.msk [vmem:[#allocation2 + $0x28] sm:$0xff] %vm209_vm0, %v1114_v15  ;;  %v238_v28 = vld [vmem:[%s1255_s21 + $0x60] sm:$0xff]  ;;  %v239_v29 = vld [vmem:[%s1255_s21 + $0x68] sm:$0xff]  ;;  %v263_v30 = vadd.f32 %v241_v27, %v240_v26  ;;  %v287_v32 = vmax.f32 %v240_v26, %v241_v27  ;;  %s1118_s15 = smov [#allocation7]  }
  0x42   : > { %216 = vst.msk [vmem:[#allocation2 + $0x30] sm:$0xff] %vm209_vm0, %v1114_v15  ;;  %217 = vst.msk [vmem:[#allocation2 + $0x38] sm:$0xff] %vm209_vm0, %v1114_v15  ;;  %v260_v31 = vadd.f32 %v239_v29, %v238_v28  ;;  %v284_v33 = vmax.f32 %v238_v28, %v239_v29  ;;  %v315_v35 = vld [vmem:[#allocation3] sm:$0xff]  ;;  %v316_v41 = vld [vmem:[#allocation3 + $0x8] sm:$0xff]  ;;  %p1028_p11 = pnand %p1027_p8, %p1444_p9  ;;  %s1030_s4 = sshll.u32 %s1118_s15, 4  ;;  %s1031_s4 = int_to_ptr.vmem [resolvable:$false] %s1030_s4 }
  0x43   : > { %v318_v53 = vld [vmem:[#allocation3 + $0x18] sm:$0xff]  ;;  %v317_v54 = vld [vmem:[#allocation3 + $0x10] sm:$0xff]  ;;  %vm1343_vm5 = vmpackc.low %vm573_vm4, %vm573_vm4  ;;  %s1032_s5 = scalar_lea.vmem %s1031_s4, 32  ;;  %p1033_p6 = scmp.lt.s32.totalorder %s1384_s10, %s1031_s4 }
  0x44   : > { %v320_v9 = vld [vmem:[#allocation3 + $0x28] sm:$0xff]  ;;  %v319_v10 = vld [vmem:[#allocation3 + $0x20] sm:$0xff]  ;;  %p1029_p0 = pneg %p1028_p11  ;;  %p1034_p13 = scmp.lt.s32.totalorder %s1032_s5, %s1026_s30 }
  0x45   : > { %252 = vadd.xlane.f32.xlu1 %v251_v13  ;;  %249 = vadd.xlane.f32.xlu0 %v248_v14  ;;  %v1116_v13 = vmov 0.0|0.0   ;;  %v322_v26 = vld [vmem:[#allocation3 + $0x38] sm:$0xff]  ;;  %v321_v27 = vld [vmem:[#allocation3 + $0x30] sm:$0xff] }
  0x46   : > { %v290_v36 = vld [vmem:[#allocation2] sm:$0xff]  ;;  %v291_v42 = vld [vmem:[#allocation2 + $0x8] sm:$0xff]  ;;  %853 = vmatprep.subr.bf16.mxu0 %v1116_v13  ;;  %865 = vmatprep.subr.bf16.mxu1 %v1116_v13  ;;  %p1035_p2 = por %p1034_p13, %p1033_p6 }
  0x47   : > { %v293_v47 = vld [vmem:[#allocation2 + $0x18] sm:$0xff]  ;;  %v292_v48 = vld [vmem:[#allocation2 + $0x10] sm:$0xff] }
  0x48   : > { %v295_v60 = vld [vmem:[#allocation2 + $0x28] sm:$0xff]  ;;  %v294_v61 = vld [vmem:[#allocation2 + $0x20] sm:$0xff]  ;;  %p1036_p5 = pnand %p1035_p2, %p1029_p0 }
  0x49   : > { %276 = vmax.xlane.f32.xlu1 %v275_v16  ;;  %273 = vmax.xlane.f32.xlu0 %v272_v17  ;;  %v297_v17 = vld [vmem:[#allocation2 + $0x38] sm:$0xff]  ;;  %v296_v20 = vld [vmem:[#allocation2 + $0x30] sm:$0xff] }
  0x4d   : > { %258 = vadd.xlane.f32.xlu1 %v257_v22  ;;  %255 = vadd.xlane.f32.xlu0 %v254_v23 }
  0x51   : > { %282 = vmax.xlane.f32.xlu1 %v281_v24  ;;  %279 = vmax.xlane.f32.xlu0 %v278_v25 }
  0x55   : > { %264 = vadd.xlane.f32.xlu1 %v263_v30  ;;  %261 = vadd.xlane.f32.xlu0 %v260_v31 }
  0x59   : > { %288 = vmax.xlane.f32.xlu1 %v287_v32  ;;  %285 = vmax.xlane.f32.xlu0 %v284_v33 }
  0xca   : > { %v268_v37 = vpop.xlane.xlu1 %267  ;;  %v244_v38 = vpop.xlane.xlu0 %243 }
  0xcb   : > { %v323_v39 = vmax.f32 %v315_v35, %v268_v37  ;;  %v298_v40 = vadd.f32 %v290_v36, %v244_v38 }
  0xcd   : > { %331 = vst.msk [vmem:[#allocation3] sm:$0xff] %vm209_vm0, %v323_v39  ;;  %307 = vst.msk [vmem:[#allocation2] sm:$0xff] %vm209_vm0, %v298_v40 }
  0xce   : > { %v271_v43 = vpop.xlane.xlu1 %270  ;;  %v247_v44 = vpop.xlane.xlu0 %246 }
  0xcf   : > { %v324_v45 = vmax.f32 %v316_v41, %v271_v43  ;;  %v299_v46 = vadd.f32 %v291_v42, %v247_v44 }
  0xd1   : > { %332 = vst.msk [vmem:[#allocation3 + $0x8] sm:$0xff] %vm209_vm0, %v324_v45  ;;  %308 = vst.msk [vmem:[#allocation2 + $0x8] sm:$0xff] %vm209_vm0, %v299_v46 }
  0xd2   : > { %v253_v49 = vpop.xlane.xlu1 %252  ;;  %v250_v50 = vpop.xlane.xlu0 %249 }
  0xd3   : > { %v301_v51 = vadd.f32 %v293_v47, %v253_v49  ;;  %v300_v52 = vadd.f32 %v292_v48, %v250_v50 }
  0xd4   : > { %v342_v57 = vld [vmem:[#allocation2] sm:$0xff] }
  0xd5   : > { %310 = vst.msk [vmem:[#allocation2 + $0x18] sm:$0xff] %vm209_vm0, %v301_v51  ;;  %309 = vst.msk [vmem:[#allocation2 + $0x10] sm:$0xff] %vm209_vm0, %v300_v52  ;;  %v358_v62 = vld [vmem:[#allocation3] sm:$0xff]  ;;  %v350_v2 = vmul.f32 0.00390625, %v342_v57 }
  0xd6   : > { %v277_v55 = vpop.xlane.xlu1 %276  ;;  %v274_v56 = vpop.xlane.xlu0 %273 }
  0xd7   : > { %v326_v58 = vmax.f32 %v318_v53, %v277_v55  ;;  %v325_v59 = vmax.f32 %v317_v54, %v274_v56  ;;  %v366_v53 = vlaneseq }
  0xd8   : > { %v359_v63 = vld [vmem:[#allocation3 + $0x8] sm:$0xff] }
  0xd9   : > { %v343_v0 = vld [vmem:[#allocation2 + $0x8] sm:$0xff]  ;;  %334 = vst.msk [vmem:[#allocation3 + $0x18] sm:$0xff] %vm209_vm0, %v326_v58  ;;  %333 = vst.msk [vmem:[#allocation3 + $0x10] sm:$0xff] %vm209_vm0, %v325_v59  ;;  %v957_v1 = vpack.i.bf16 %v359_v63, %v358_v62  ;;  %v367_v54 = vand.u32 127, %v366_v53 }
  0xda   : > { %v351_v3 = vmul.f32 0.00390625, %v343_v0  ;;  %v259_v4 = vpop.xlane.xlu1 %258  ;;  %v256_v5 = vpop.xlane.xlu0 %255 }
  0xdb   : > { %v303_v6 = vadd.f32 %v295_v60, %v259_v4  ;;  %v302_v7 = vadd.f32 %v294_v61, %v256_v5  ;;  %958 = vperm.xlu1 %956, %v957_v1   ;;  %vm368_vm2 = vcmp.eq.s32.totalorder %v367_v54, 0 }
  0xdc   : > { %v951_v8 = vpack.i.bf16 %v351_v3, %v350_v2  ;;  %v344_v30 = vld [vmem:[#allocation2 + $0x10] sm:$0xff]  ;;  %v345_v31 = vld [vmem:[#allocation2 + $0x18] sm:$0xff] }
  0xdd   : > { %312 = vst.msk [vmem:[#allocation2 + $0x28] sm:$0xff] %vm209_vm0, %v303_v6  ;;  %311 = vst.msk [vmem:[#allocation2 + $0x20] sm:$0xff] %vm209_vm0, %v302_v7  ;;  %v352_v37 = vmul.f32 0.00390625, %v344_v30  ;;  %v353_v38 = vmul.f32 0.00390625, %v345_v31  ;;  %v459_v30 = vld [vmem:[%s1433_s2 + $0x8] sm:$0xff] }
  0xde   : > { %952 = vperm.xlu0 %950, %v951_v8   ;;  %v283_v11 = vpop.xlane.xlu1 %282  ;;  %v280_v12 = vpop.xlane.xlu0 %279 }
  0xdf   : > { %v328_v14 = vmax.f32 %v320_v9, %v283_v11  ;;  %v327_v16 = vmax.f32 %v319_v10, %v280_v12  ;;  %v972_v43 = vpack.i.bf16 %v353_v38, %v352_v37  ;;  %v463_v37 = vld [vmem:[%s1433_s2 + $0x28] sm:$0xff] }
  0xe0   : > { %v360_v18 = vld [vmem:[#allocation3 + $0x10] sm:$0xff]  ;;  %v361_v19 = vld [vmem:[#allocation3 + $0x18] sm:$0xff] }
  0xe1   : > { %336 = vst.msk [vmem:[#allocation3 + $0x28] sm:$0xff] %vm209_vm0, %v328_v14  ;;  %335 = vst.msk [vmem:[#allocation3 + $0x20] sm:$0xff] %vm209_vm0, %v327_v16  ;;  %v962_v21 = vpack.i.bf16 %v361_v19, %v360_v18 }
  0xe2   : > { %v265_v22 = vpop.xlane.xlu1 %264  ;;  %v262_v23 = vpop.xlane.xlu0 %261 }
  0xe3   : > { %963 = vperm.xlu1 %956, %v962_v21   ;;  %v305_v24 = vadd.f32 %v297_v17, %v265_v22  ;;  %v304_v25 = vadd.f32 %v296_v20, %v262_v23 }
  0xe4   : > { %v346_v39 = vld [vmem:[#allocation2 + $0x20] sm:$0xff]  ;;  %v347_v40 = vld [vmem:[#allocation2 + $0x28] sm:$0xff] }
  0xe5   : > { %314 = vst.msk [vmem:[#allocation2 + $0x38] sm:$0xff] %vm209_vm0, %v305_v24  ;;  %313 = vst.msk [vmem:[#allocation2 + $0x30] sm:$0xff] %vm209_vm0, %v304_v25  ;;  %v354_v44 = vmul.f32 0.00390625, %v346_v39  ;;  %v355_v45 = vmul.f32 0.00390625, %v347_v40  ;;  %v464_v39 = vld [vmem:[%s1433_s2 + $0x30] sm:$0xff]  ;;  %v465_v40 = vld [vmem:[%s1433_s2 + $0x38] sm:$0xff] }
  0xe6   : > { %v289_v28 = vpop.xlane.xlu1 %288  ;;  %v286_v29 = vpop.xlane.xlu0 %285 }
  0xe7   : > { %v330_v32 = vmax.f32 %v322_v26, %v289_v28  ;;  %v329_v33 = vmax.f32 %v321_v27, %v286_v29  ;;  %v977_v48 = vpack.i.bf16 %v355_v45, %v354_v44  ;;  %v457_v28 = vld [vmem:[%s1432_s1] sm:$0xf] }
  0xe8   : > { %v362_v34 = vld [vmem:[#allocation3 + $0x20] sm:$0xff]  ;;  %v363_v35 = vld [vmem:[#allocation3 + $0x28] sm:$0xff] }
  0xe9   : > { %v967_v36 = vpack.i.bf16 %v363_v35, %v362_v34  ;;  %338 = vst.msk [vmem:[#allocation3 + $0x38] sm:$0xff] %vm209_vm0, %v330_v32  ;;  %337 = vst.msk [vmem:[#allocation3 + $0x30] sm:$0xff] %vm209_vm0, %v329_v33  ;;  %v458_v29 = vld [vmem:[%s1433_s2] sm:$0xff]  ;;  %v460_v33 = vld [vmem:[%s1433_s2 + $0x10] sm:$0xff] }
  0xea   : > { %v866_v31 = vpack.c.bf16 %v459_v30, %v458_v29  ;;  %v461_v34 = vld [vmem:[%s1433_s2 + $0x18] sm:$0xff] }
  0xeb   : > { %968 = vperm.xlu1 %956, %v967_v36   ;;  %v870_v35 = vpack.c.bf16 %v461_v34, %v460_v33  ;;  %v462_v36 = vld [vmem:[%s1433_s2 + $0x20] sm:$0xff] }
  0xec   : > { %v348_v41 = vld [vmem:[#allocation2 + $0x30] sm:$0xff]  ;;  %v349_v42 = vld [vmem:[#allocation2 + $0x38] sm:$0xff]  ;;  %868 = vmatpush3.bf16.xpose.msk.msra.mxu1 %vm1343_vm5, %v866_v31  ;;  %v874_v38 = vpack.c.bf16 %v463_v37, %v462_v36 }
  0xed   : > { %v356_v46 = vmul.f32 0.00390625, %v348_v41  ;;  %v357_v47 = vmul.f32 0.00390625, %v349_v42  ;;  %869 = vmatprep.subr.bf16.mxu1 %v1116_v13  ;;  %v878_v41 = vpack.c.bf16 %v465_v40, %v464_v39 }
  0xef   : > { %973 = vperm.xlu1 %956, %v972_v43   ;;  %v982_v49 = vpack.i.bf16 %v357_v47, %v356_v46 }
  0xf0   : > { %v364_v50 = vld [vmem:[#allocation3 + $0x30] sm:$0xff]  ;;  %v365_v51 = vld [vmem:[#allocation3 + $0x38] sm:$0xff] }
  0xf1   : > { %v987_v52 = vpack.i.bf16 %v365_v51, %v364_v50 }
  0xf3   : > { %978 = vperm.xlu1 %956, %v977_v48  }
  0xf4   : > { %872 = vmatpush3.bf16.xpose.msk.msra.mxu1 %vm1343_vm5, %v870_v35 }
  0xf5   : > { %873 = vmatprep.subr.bf16.mxu1 %v1116_v13 }
  0xf7   : > { %983 = vperm.xlu1 %956, %v982_v49  }
  0xfb   : > { %988 = vperm.xlu1 %956, %v987_v52  }
  0xfc   : > { %876 = vmatpush3.bf16.xpose.msk.msra.mxu1 %vm1343_vm5, %v874_v38 }
  0xfd   : > { %877 = vmatprep.subr.bf16.mxu1 %v1116_v13 }
 0x104   : > { %880 = vmatpush3.bf16.xpose.msk.msra.mxu1 %vm1343_vm5, %v878_v41 }
 0x15a   : > { %v959_v55 = vpop.permute.xlu1 %958 }
 0x15b   : > { %v961_v57 = vunpack.i.h.bf16 %v959_v55  ;;  %v960_v58 = vunpack.i.l.bf16 %v959_v55 }
 0x15d   : > { %v953_v56 = vpop.permute.xlu0 %952 }
 0x15e   : > { %v955_v59 = vunpack.i.h.bf16 %v953_v56  ;;  %v954_v60 = vunpack.i.l.bf16 %v953_v56 }
 0x160   : > { %v449_v61 = vsel %vm368_vm2, %v954_v60, %v960_v58  ;;  %v450_v62 = vsel %vm368_vm2, %v955_v59, %v961_v57 }
 0x161   : > { %v854_v63 = vpack.c.bf16 %v450_v62, %v449_v61 }
 0x162   : > { %v964_v0 = vpop.permute.xlu1 %963 }
 0x163   : > { %855 = vmatpush3.bf16.msra.mxu0 %v854_v63  ;;  %v966_v2 = vunpack.i.h.bf16 %v964_v0  ;;  %v965_v3 = vunpack.i.l.bf16 %v964_v0 }
 0x164   : > { %856 = vmatprep.subr.bf16.mxu0 %v1116_v13 }
 0x16a   : > { %v969_v1 = vpop.permute.xlu1 %968 }
 0x16b   : > { %v971_v10 = vunpack.i.h.bf16 %v969_v1  ;;  %v970_v11 = vunpack.i.l.bf16 %v969_v1 }
 0x16e   : > { %v974_v15 = vpop.permute.xlu1 %973 }
 0x16f   : > { %v976_v4 = vunpack.i.h.bf16 %v974_v15  ;;  %v975_v5 = vunpack.i.l.bf16 %v974_v15 }
 0x171   : > { %v451_v6 = vsel %vm368_vm2, %v975_v5, %v965_v3  ;;  %v452_v7 = vsel %vm368_vm2, %v976_v4, %v966_v2 }
 0x172   : > { %v979_v8 = vpop.permute.xlu1 %978  ;;  %v857_v9 = vpack.c.bf16 %v452_v7, %v451_v6 }
 0x173   : > { %v981_v12 = vunpack.i.h.bf16 %v979_v8  ;;  %v980_v14 = vunpack.i.l.bf16 %v979_v8 }
 0x174   : > { %858 = vmatpush3.bf16.msra.mxu0 %v857_v9 }
 0x175   : > { %859 = vmatprep.subr.bf16.mxu0 %v1116_v13  ;;  %v453_v16 = vsel %vm368_vm2, %v980_v14, %v970_v11  ;;  %v454_v17 = vsel %vm368_vm2, %v981_v12, %v971_v10 }
 0x176   : > { %v984_v18 = vpop.permute.xlu1 %983  ;;  %v860_v19 = vpack.c.bf16 %v454_v17, %v453_v16 }
 0x177   : > { %v986_v21 = vunpack.i.h.bf16 %v984_v18  ;;  %v985_v22 = vunpack.i.l.bf16 %v984_v18 }
 0x178   : > { %861 = vmatpush3.bf16.msra.mxu0 %v860_v19 }
 0x179   : > { %862 = vmatprep.subr.bf16.mxu0 %v1116_v13 }
 0x17a   : > { %v989_v20 = vpop.permute.xlu1 %988 }
 0x17b   : > { %v991_v23 = vunpack.i.h.bf16 %v989_v20  ;;  %v990_v24 = vunpack.i.l.bf16 %v989_v20 }
 0x17d   : > { %v455_v25 = vsel %vm368_vm2, %v985_v22, %v990_v24  ;;  %v456_v26 = vsel %vm368_vm2, %v986_v21, %v991_v23 }
 0x17e   : > { %v863_v27 = vpack.c.bf16 %v456_v26, %v455_v25 }
 0x180   : > { %864 = vmatpush3.bf16.msra.mxu0 %v863_v27 }
 0x183   : > { %832 = vmatmul.mubr.msk.f32.vlgmr.msra.gmra.mrb[0].mxu0 %vm466_vm3, %v457_v28 }
 0x256   : > { %v536_v42 = vpop.f32.mrb[0].mxu0 }
 0x257   : > { %v540_v43 = vmax.f32 %v536_v42, 0.0  ;;  %v833_v44 = vpop.f32.mrb[1].mxu0 }
 0x259   : > { %541 = vxpose.xlu1.b32.start.end [1/1] (short) (narrow) %v540_v43, 8 }
 0x2d9   : > { %v557_v45 = vpop.trf.xlu1 }
 0x2da   : > { %851 = vmatmul.mubr.msk.f32.vlgmr.msra.gmra.mrb[0].mxu1 %vm573_vm4, %v557_v45 }
 0x3ad   : > { %v667_v13 = vpop.f32.mrb[0].mxu1 }
 0x3ae   : > { %v672_v46 = vrot.slane %v667_v13, 1  ;;  %v852_v47 = vpop.f32.mrb[1].mxu1 }
 0x3b0   : > { %v674_v48 = vadd.f32 %v672_v46, %v667_v13 }
 0x3b2   : > { %v792_v49 = vmul.f32 -1.442695, %v674_v48 }
 0x3b4   : > { %992 = vpow2.f32 %v792_v49 }
 0x3be   : > { %v993_v50 = vpop.eup %992 }
 0x3bf   : > { %v678_v51 = vadd.f32 1.0, %v993_v50 }
 0x3c1   : > { %994 = vrcp.f32 %v678_v51 }
 0x3cb   : > { %v995_v52 = vpop.eup %994 }
 0x3cc   : > { %682 = vst.msk [vmem:[%s203_s9] sm:$0x1] %vm681_vm6, %v995_v52 }
 0x3cd   : > { %1039 = shalt.err (!%p1036_p5)
}
 0x3ce   : > { %s1040_s11 = scalar_lea.hbm %s1382_s28, 16  ;;  %s1044_s19 = scalar_lea.hbm %s1434_s3, 32 }
 0x3cf   : > { %p1041_p4 = scmp.ne.s32.totalorder %s1382_s28, %s1040_s11  ;;  %p1045_p12 = scmp.lt.u32.totalorder %s1382_s28, %s1434_s3 }
 0x3d0   : > { %p1046_p1 = scmp.lt.u32.totalorder %s1044_s19, %s1040_s11  ;;  %p1048_p8 = scmp.lt.u32.totalorder %s1040_s11, %s1382_s28 }
 0x3d1   : > { %p1042_p7 = pnand %p1041_p4, %p1444_p9 }
 0x3d2   : > { %p1047_p3 = por %p1046_p1, %p1045_p12 }
 0x3d3   : > { %p1043_p10 = pneg %p1042_p7 }
 0x3d4   : > { %p1049_p11 = por %p1048_p8, %p1047_p3 }
 0x3d6   : > { %p1050_p0 = pnand %p1049_p11, %p1043_p10 }
 0x3d8   : > { %1053 = shalt.err (!%p1050_p0)
}
 0x3d9   : > { %883 = dma.vmem_to_hbm [thread:$0]  (%p1444_p9), %s1384_s10, 16, %s1382_s28, %s684_s29  }
 0x3da PF: > { %s708_s6 = sand.u32 1, %s1088_s12   ;;  %p1445_p6 = scmp.ne.s32.totalorder %s1439_s27, 0 }
 0x3db   : > { %p1446_p13 = scmp.ge.s32.totalorder %s1108_s17, 2  ;;  %s709_s8 = scalar_lea.sflag [#allocation6], %s708_s6 }
 0x3dd   : > { %p890_p2 = pnand %p1446_p13, %p1445_p6 }
 0x3df   : > { %1083 = dma.done.wait (!%p890_p2), %s709_s8, 16  }
 0x3e0   : > { %1085 = vsyncadd (!%p890_p2), %s709_s8, 4294967280  ;;  %s19_s17 = sadd.s32 1, %s1108_s17   ;;  %s1447_s12 = smov %s1092_s13 }
 0x3e1   : > { %p16_p5 = scmp.ge.s32.totalorder %s19_s17, 4   ;;  %s1448_s13 = smov %s1096_s14 }
 0x3e2   : > { %s1449_s14 = smov %s1195_s26  ;;  %s1450_s15 = smov %s1104_s16 }
 0x3e3   : > { %s1451_s16 = smov %s1453_s20  ;;  %18 = sbr.rel (!%p16_p5) target bundleno = 6 (0x6), region = 85 }
 0x3ea   :  { %713 = vsyncpa [#allocation5], 1 }
 0x3eb   :  { %715 = vsyncpa [#allocation5 + $0x1], 1 }
 0x3ec   :  { %716 = vsyncpa [#allocation6], 1 }
 0x3ed   :  { %718 = vsyncpa [#allocation6 + $0x1], 1 }

</bundles_post_ra>
